<compile_context>
chip_gen: v7x
topology: tpu7x:2x2x1
jax: 0.10.0
libtpu: 0.0.40
codegen_flags: <defaults>
</compile_context>

<pallas_src>
import functools
import math

import jax
import jax.numpy as jnp
from jax import lax
from jax.experimental import pallas as pl
from jax.experimental.pallas import tpu as pltpu

D_MODEL = 32
MAX_LENGTH = 500
DROPOUT_P = 0.1

_VMEM_BLOCK_BUDGET = 4 * 1024 * 1024   # bytes of x per block (safe on v5e/v6e/v7x)


def make_pe(max_length=MAX_LENGTH, d_model=D_MODEL):
    """Deterministic sinusoidal table, identical math to the torch __init__ ([L, D])."""
    position = jnp.arange(max_length, dtype=jnp.float32)[:, None]                 # [L,1]
    div_term = jnp.exp(
        jnp.arange(0, d_model, 2, dtype=jnp.float32) * (-math.log(10000.0) / d_model))
    pe = jnp.zeros((max_length, d_model), jnp.float32)
    pe = pe.at[:, 0::2].set(jnp.sin(position * div_term))
    pe = pe.at[:, 1::2].set(jnp.cos(position * div_term))
    return pe  # torch stores this as [max_length, 1, d_model]


# ---------------------------------------------------------------------------
# Kernels (blocks: x/pe/out = [ts, B*D], lane-dense)
# ---------------------------------------------------------------------------
def _add_pe_kernel(x_ref, pe_ref, o_ref):
    o_ref[...] = x_ref[...] + pe_ref[...]


def _splitmix32(z):
    """fmix32-style avalanche; uint32 in, uint32 out (wrapping arithmetic)."""
    z = z + jnp.uint32(0x9E3779B9)
    z = (z ^ (z >> jnp.uint32(16))) * jnp.uint32(0x85EBCA6B)
    z = (z ^ (z >> jnp.uint32(13))) * jnp.uint32(0xC2B2AE35)
    return z ^ (z >> jnp.uint32(16))


def _add_pe_dropout_kernel(seed_ref, x_ref, pe_ref, o_ref, *,
                           block_rows, keep_threshold_i32, inv_keep):
    y = x_ref[...] + pe_ref[...]
    rows, cols = y.shape
    # Global element index (tiling-independent -> mask is deterministic per seed).
    r = lax.broadcasted_iota(jnp.int32, (rows, cols), 0).astype(jnp.uint32)
    c = lax.broadcasted_iota(jnp.int32, (rows, cols), 1).astype(jnp.uint32)
    row0 = (pl.program_id(0) * block_rows).astype(jnp.uint32)
    idx = (r + row0) * jnp.uint32(cols) + c
    # Counter-based hash RNG: plain VPU integer ops (no pltpu.prng_* needed).
    key = (seed_ref[0].astype(jnp.uint32) * jnp.uint32(0x85EBCA6B)
           + jnp.uint32(0x9E3779B9))
    bits = lax.bitcast_convert_type(_splitmix32(idx ^ key), jnp.int32)
    # keep iff bits >= T with T = round(p*2^32) - 2^31  =>  P(keep) = 1 - p.
    keep = bits >= jnp.int32(keep_threshold_i32)
    o_ref[...] = jnp.where(keep, y * jnp.float32(inv_keep), jnp.zeros_like(y))


# ---------------------------------------------------------------------------
# Wrapper
# ---------------------------------------------------------------------------
def pos_embedding(x, pe, *, training=False, dropout_p=DROPOUT_P, seed=0,
                  max_block_rows=None):
    """x: [S, B, D] float32, pe: [max_length, D] float32 -> [S, B, D]."""
    S, B, D = x.shape
    if S > pe.shape[0]:
        raise ValueError("sequence length exceeds the PE table length")
    BD = B * D
    x2d = x.reshape(S, BD)                                   # free, lane-dense
    pe2d = jnp.tile(pe[:S, :], (1, B)).astype(x.dtype)       # [S, B*D], tiny

    # Sequence-tile size: whole tensor in one block when it fits the budget,
    # otherwise the largest multiple-of-8 row count under the budget.
    itemsize = jnp.dtype(x.dtype).itemsize
    ts = max(8, (_VMEM_BLOCK_BUDGET // max(BD * itemsize, 1)) // 8 * 8)
    if max_block_rows is not None:
        ts = min(ts, max(8, (max_block_rows // 8) * 8))
    if S <= ts:
        ts = S                              # full-extent block
    grid = (pl.cdiv(S, ts),)                # ragged last tile handled by Pallas

    x_spec = pl.BlockSpec((ts, BD), lambda i: (i, 0))
    pe_spec = pl.BlockSpec((ts, BD), lambda i: (i, 0))
    out_spec = pl.BlockSpec((ts, BD), lambda i: (i, 0))
    out_shape = jax.ShapeDtypeStruct((S, BD), x.dtype)
    cparams = pltpu.CompilerParams(dimension_semantics=("parallel",))

    if (not training) or dropout_p <= 0.0:
        out2d = pl.pallas_call(
            _add_pe_kernel,
            out_shape=out_shape, grid=grid,
            in_specs=[x_spec, pe_spec], out_specs=out_spec,
            compiler_params=cparams,
        )(x2d, pe2d)
    else:
        keep_threshold_i32 = int(round(dropout_p * (1 << 32))) - (1 << 31)
        seed_arr = jnp.asarray([seed], dtype=jnp.int32)
        out2d = pl.pallas_call(
            functools.partial(_add_pe_dropout_kernel,
                              block_rows=ts,
                              keep_threshold_i32=keep_threshold_i32,
                              inv_keep=1.0 / (1.0 - dropout_p)),
            out_shape=out_shape, grid=grid,
            in_specs=[pl.BlockSpec(memory_space=pltpu.MemorySpace.SMEM),  # seed
                      x_spec, pe_spec],
            out_specs=out_spec,
            compiler_params=cparams,
        )(seed_arr, x2d, pe2d)
    return out2d.reshape(S, B, D)


# ---------------------------------------------------------------------------
if __name__ == "__main__":
    pe = make_pe()

    # Small shape consistent with the module (seq=8, batch=2, d_model=32).
    S, B, D = 8, 2, D_MODEL
    x = jax.random.normal(jax.random.PRNGKey(0), (S, B, D), dtype=jnp.float32)
    out = jax.block_until_ready(pos_embedding(x, pe, training=False))
    ref = x + pe[:S][:, None, :]
    assert out.shape == (S, B, D)
    assert jnp.allclose(out, ref, atol=1e-6, rtol=1e-6)

    # Full PE length (S=500, not a multiple of 8) with a forced multi-block grid
    # (ragged last tile) to exercise the cdiv path.
    S2 = MAX_LENGTH
    x2 = jax.random.normal(jax.random.PRNGKey(1), (S2, B, D), dtype=jnp.float32)
    out2 = jax.block_until_ready(pos_embedding(x2, pe, max_block_rows=128))
    ref2 = x2 + pe[:S2][:, None, :]
    assert jnp.allclose(out2, ref2, atol=1e-6, rtol=1e-6)

    # Training path: kept entries equal (x + pe) / (1 - p); drop rate ~= p.
    out_tr = jax.block_until_ready(pos_embedding(x2, pe, training=True, seed=1234))
    scale = 1.0 / (1.0 - DROPOUT_P)
    scaled = ref2 * scale
    kept = out_tr != 0.0
    assert jnp.allclose(jnp.where(kept, out_tr, scaled), scaled, atol=1e-5, rtol=1e-5)
    drop_frac = 1.0 - float(jnp.mean(kept.astype(jnp.float32)))
    assert 0.04 < drop_frac < 0.18, drop_frac

    print("KERNEL_OK")
</pallas_src>

<mosaic_0001>
module attributes {stable_mosaic.version = 11 : i64} {
  func.func @_add_pe_kernel(%arg0: i32, %arg1: memref<8x64xf32, #tpu.memory_space<vmem>>, %arg2: memref<8x64xf32, #tpu.memory_space<vmem>>, %arg3: memref<8x64xf32, #tpu.memory_space<vmem>>) attributes {dimension_semantics = [#tpu.dimension_semantics<parallel>], iteration_bounds = array<i64: 1>, scalar_prefetch = 0 : i64, scratch_operands = 0 : i64, tpu.core_type = #tpu.core_type<tc>, window_params = [{transform_indices = @transform_0, window_bounds = array<i64: 8, 64>}, {transform_indices = @transform_1, window_bounds = array<i64: 8, 64>}, {transform_indices = @transform_2, window_bounds = array<i64: 8, 64>}]} {
    %c0 = arith.constant 0 : index
    %c0_0 = arith.constant 0 : index
    %0 = vector.load %arg1[%c0, %c0_0] : memref<8x64xf32, #tpu.memory_space<vmem>>, vector<8x64xf32>
    %c0_1 = arith.constant 0 : index
    %c0_2 = arith.constant 0 : index
    %1 = vector.load %arg2[%c0_1, %c0_2] : memref<8x64xf32, #tpu.memory_space<vmem>>, vector<8x64xf32>
    %2 = arith.addf %0, %1 : vector<8x64xf32>
    %c0_3 = arith.constant 0 : index
    %c0_4 = arith.constant 0 : index
    %3 = vector.load %arg3[%c0_3, %c0_4] : memref<8x64xf32, #tpu.memory_space<vmem>>, vector<8x64xf32>
    tpu.vector_store %arg3[%c0_3, %c0_4], %2 {strides = array<i32>} : memref<8x64xf32, #tpu.memory_space<vmem>>, vector<8x64xf32>,
    return
  }
  func.func @transform_0(%arg0: i32) -> (i32, i32) {
    %c0_i32 = arith.constant 0 : i32
    %c0_i32_0 = arith.constant 0 : i32
    return %arg0, %c0_i32 : i32, i32
  }
  func.func @transform_1(%arg0: i32) -> (i32, i32) {
    %c0_i32 = arith.constant 0 : i32
    %c0_i32_0 = arith.constant 0 : i32
    return %arg0, %c0_i32 : i32, i32
  }
  func.func @transform_2(%arg0: i32) -> (i32, i32) {
    %c0_i32 = arith.constant 0 : i32
    %c0_i32_0 = arith.constant 0 : i32
    return %arg0, %c0_i32 : i32, i32
  }
}

</mosaic_0001>

<bundles_post_ra>
// kernel: tpu_custom_call.1
= control target key start
LH: loop header
LB: loop body
LE: loop exit
PB: predicated region body
PF: predicated region fallthrough
CT: control target
= control target key end

     0   :  { %7 = vsyncpa [#allocation3], 0  ;;  %s186_s0 = inlined_call_operand.hbm [shape: f32[8,64], index: 0, kind: input, shape index: {}]   ;;  %s187_s1 = inlined_call_operand.hbm [shape: f32[8,64], index: 1, kind: input, shape index: {}]   ;;  %s188_s2 = inlined_call_operand.hbm [shape: f32[8,64], index: 2, kind: output, shape index: {}]  }
   0x1   :  { %8 = vsyncpa [#allocation6], 0 }
   0x2   :  { %9 = vsyncpa [#allocation4], 0  ;;  %s132_s9 = smov [#allocation2]   ;;  %s133_s11 = smov [#allocation5]  }
   0x3   :  { %s16_s10 = sshll.u32 %s132_s9, 4  ;;  %s26_s12 = sshll.u32 %s133_s11, 4  ;;  %s17_s10 = int_to_ptr.vmem [resolvable:$true] %s16_s10  ;;  %s27_s12 = int_to_ptr.vmem [resolvable:$true] %s26_s12 }
   0x4   :  { %s60_s15 = scalar_lea.hbm %s186_s0, 128 }
   0x5   :  { %p61_p0 = scmp.ne.s32.totalorder %s186_s0, %s60_s15  ;;  %p64_p1 = scmp.lt.u32.totalorder %s60_s15, %s186_s0 }
   0x7   :  { %p66_p2 = pnand %p64_p1, %p61_p0 }
   0x9   :  { %69 = shalt.err (!%p66_p2)
}
   0xa   :  { %s70_s20 = scalar_lea.vmem %s17_s10, 128  ;;  %p75_p4 = scmp.lt.s32.totalorder %s17_s10, %s17_s10 }
   0xb   :  { %p71_p3 = scmp.ne.s32.totalorder %s17_s10, %s70_s20  ;;  %p76_p5 = scmp.lt.s32.totalorder %s70_s20, %s70_s20 }
   0xd   :  { %p77_p6 = por %p76_p5, %p75_p4 }
   0xf   :  { %p78_p7 = pnand %p77_p6, %p71_p3 }
  0x11   :  { %81 = shalt.err (!%p78_p7)
}
  0x12   :  { %19 = dma.hbm_to_vmem [thread:$0]  %s186_s0, 128, %s17_s10, [#allocation3]  }
  0x13   :  { %s82_s25 = scalar_lea.hbm %s187_s1, 128 }
  0x14   :  { %p83_p8 = scmp.ne.s32.totalorder %s187_s1, %s82_s25  ;;  %p86_p9 = scmp.lt.u32.totalorder %s82_s25, %s187_s1 }
  0x16   :  { %p88_p10 = pnand %p86_p9, %p83_p8 }
  0x18   :  { %91 = shalt.err (!%p88_p10)
}
  0x19   :  { %s92_s30 = scalar_lea.vmem %s27_s12, 128  ;;  %p97_p12 = scmp.lt.s32.totalorder %s27_s12, %s27_s12 }
  0x1a   :  { %p93_p11 = scmp.ne.s32.totalorder %s27_s12, %s92_s30  ;;  %p98_p13 = scmp.lt.s32.totalorder %s92_s30, %s92_s30 }
  0x1c   :  { %p99_p0 = por %p98_p13, %p97_p12 }
  0x1e   :  { %p100_p1 = pnand %p99_p0, %p93_p11 }
  0x20   :  { %103 = shalt.err (!%p100_p1)
}
  0x21   :  { %29 = dma.hbm_to_vmem [thread:$0]  %s187_s1, 128, %s27_s12, [#allocation6]  }
  0x22   :  { %126 = dma.done.wait [#allocation3], 128  }
  0x23   :  { %127 = vsyncadd [#allocation3], 4294967168 }
  0x24   :  { %128 = dma.done.wait [#allocation6], 128  }
  0x25   :  { %129 = vsyncadd [#allocation6], 4294967168  ;;  %s134_s4 = smov [#allocation7]   ;;  %v36_v0 = vld [vmem:[#allocation2] sm:$0xff]  ;;  %v37_v1 = vld [vmem:[#allocation5] sm:$0xff]  ;;  %vm39_vm0 = vcmask 523264  }
  0x26   :  { %s47_s5 = sshll.u32 %s134_s4, 4  ;;  %v38_v2 = vadd.f32 %v37_v1, %v36_v0  ;;  %s48_s5 = int_to_ptr.vmem [resolvable:$true] %s47_s5 }
  0x27   :  { %s104_s6 = scalar_lea.vmem %s48_s5, 128  ;;  %p109_p3 = scmp.lt.s32.totalorder %s48_s5, %s48_s5 }
  0x28   :  { %40 = vst.msk [vmem:[#allocation7] sm:$0xff] %vm39_vm0, %v38_v2  ;;  %p105_p2 = scmp.ne.s32.totalorder %s48_s5, %s104_s6  ;;  %p110_p4 = scmp.lt.s32.totalorder %s104_s6, %s104_s6 }
  0x2a   :  { %p111_p5 = por %p110_p4, %p109_p3 }
  0x2c   :  { %p112_p6 = pnand %p111_p5, %p105_p2 }
  0x2e   :  { %115 = shalt.err (!%p112_p6)
}
  0x2f   :  { %s116_s8 = scalar_lea.hbm %s188_s2, 128 }
  0x30   :  { %p117_p7 = scmp.ne.s32.totalorder %s188_s2, %s116_s8  ;;  %p120_p8 = scmp.lt.u32.totalorder %s116_s8, %s188_s2 }
  0x32   :  { %p122_p9 = pnand %p120_p8, %p117_p7 }
  0x34   :  { %125 = shalt.err (!%p122_p9)
}
  0x35   :  { %50 = dma.vmem_to_hbm [thread:$0]  %s48_s5, 128, %s188_s2, [#allocation4]  }
  0x36   :  { %130 = dma.done.wait [#allocation4], 128  }
  0x37   :  { %131 = vsyncadd [#allocation4], 4294967168 }
  0x38   :  { %54 = vsyncpa [#allocation3], 1 }
  0x39   :  { %55 = vsyncpa [#allocation6], 1 }
  0x3a   :  { %56 = vsyncpa [#allocation4], 1 }

</bundles_post_ra>
